<compile_context>
chip_gen: v5e
topology: v5e:2x2
jax: 0.10.0
libtpu: 0.0.40
codegen_flags: <defaults>
</compile_context>

<pallas_src>
import jax
import jax.numpy as jnp
from jax.experimental import pallas as pl
from jax.experimental.pallas import tpu as pltpu


def _logreg_kernel(w_ref, b_ref, xt_ref, o_ref):
    # w_ref: (2,)  SMEM scalars   (W flattened, row-major: [w00, w01])
    # b_ref: (1,)  SMEM scalar
    # xt_ref: (2, TN) VMEM  -- features x batch (batch on the lane axis)
    # o_ref:  (1, TN) VMEM  -- lane-dense output
    w0 = w_ref[0]
    w1 = w_ref[1]
    b = b_ref[0]

    x0 = xt_ref[0:1, :]          # (1, TN)
    x1 = xt_ref[1:2, :]          # (1, TN)

    # Linear layer on the VPU only (no MXU for a K=2, out=1 "matmul").
    z = x0 * w0 + x1 * w1 + b

    # Sigmoid: exp on the EUP, approx reciprocal on the EUP (VPU stays free).
    e = jnp.exp(-z)
    o_ref[...] = pl.reciprocal(1.0 + e, approx=True).astype(o_ref.dtype)


def logistic_regression(x, w, b, *, tn=512):
    """x: (N, 2) f32, w: (1, 2) f32, b: (1,) f32 -> (N, 1) f32."""
    n, in_f = x.shape
    out_f = w.shape[0]
    assert in_f == 2 and out_f == 1

    # Lane-dense layout: batch on the lane (last) axis.
    xt = x.T                                      # (2, N)

    # Tile width: multiple of 128 lanes; don't over-pad tiny batches.
    tn_eff = min(tn, ((n + 127) // 128) * 128)
    n_pad = pl.cdiv(n, tn_eff) * tn_eff
    if n_pad != n:
        xt = jnp.pad(xt, ((0, 0), (0, n_pad - n)))

    w_flat = w.reshape(-1).astype(jnp.float32)    # (2,) -> SMEM
    b_flat = b.reshape(-1).astype(jnp.float32)    # (1,) -> SMEM

    grid = (n_pad // tn_eff,)

    out_t = pl.pallas_call(
        _logreg_kernel,
        out_shape=jax.ShapeDtypeStruct((out_f, n_pad), x.dtype),
        grid_spec=pltpu.PrefetchScalarGridSpec(
            num_scalar_prefetch=0,
            grid=grid,
            in_specs=[
                pl.BlockSpec(memory_space=pltpu.MemorySpace.SMEM),   # w
                pl.BlockSpec(memory_space=pltpu.MemorySpace.SMEM),   # b
                pl.BlockSpec((in_f, tn_eff), lambda i: (0, i)),      # x^T tile
            ],
            out_specs=pl.BlockSpec((out_f, tn_eff), lambda i: (0, i)),
        ),
        compiler_params=pltpu.CompilerParams(
            dimension_semantics=("parallel",),        # megacore on v7x
            vmem_limit_bytes=32 * 1024 * 1024,        # safe on v5e/v6e/v7x
        ),
        cost_estimate=pl.CostEstimate(
            flops=5 * n_pad,                          # 2 mul + 2 add + 1 add
            transcendentals=n_pad,                    # exp
            bytes_accessed=12 * n_pad,                # 8 B in + 4 B out per row
        ),
    )(w_flat, b_flat, xt)

    # Back to the PyTorch layout: (N, 1).
    return out_t[:, :n].T


if __name__ == "__main__":
    key = jax.random.PRNGKey(0)
    kx, kw, kb = jax.random.split(key, 3)

    # nn.Linear(2, 1): W (1, 2), b (1,)
    batch = 8
    x = jax.random.normal(kx, (batch, 2), dtype=jnp.float32)
    bound = 1.0 / jnp.sqrt(2.0)
    w = jax.random.uniform(kw, (1, 2), minval=-bound, maxval=bound,
                           dtype=jnp.float32)
    b = jax.random.uniform(kb, (1,), minval=-bound, maxval=bound,
                           dtype=jnp.float32)

    out = logistic_regression(x, w, b)
    jax.block_until_ready(out)

    # Reference check against plain JAX (loose tolerance: approx reciprocal).
    ref = jax.nn.sigmoid(x @ w.T + b)
    assert out.shape == (batch, 1)
    assert jnp.allclose(out, ref, atol=5e-3, rtol=5e-3)
    print("KERNEL_OK")
</pallas_src>

<mosaic_0001>
module attributes {stable_mosaic.version = 11 : i64} {
  func.func @_logreg_kernel(%arg0: i32, %arg1: memref<2xf32, #tpu.memory_space<smem>>, %arg2: memref<1xf32, #tpu.memory_space<smem>>, %arg3: memref<2x128xf32, #tpu.memory_space<vmem>>, %arg4: memref<1x128xf32, #tpu.memory_space<vmem>>) attributes {dimension_semantics = [#tpu.dimension_semantics<parallel>], iteration_bounds = array<i64: 1>, scalar_prefetch = 0 : i64, scratch_operands = 0 : i64, tpu.core_type = #tpu.core_type<tc>, window_params = [{transform_indices = @transform_0, window_bounds = array<i64: 2>}, {transform_indices = @transform_1, window_bounds = array<i64: 1>}, {transform_indices = @transform_2, window_bounds = array<i64: 2, 128>}, {transform_indices = @transform_3, window_bounds = array<i64: 1, 128>}]} {
    %c0 = arith.constant 0 : index
    %0 = memref.load %arg1[%c0] : memref<2xf32, #tpu.memory_space<smem>>
    %c1 = arith.constant 1 : index
    %1 = memref.load %arg1[%c1] : memref<2xf32, #tpu.memory_space<smem>>
    %c0_0 = arith.constant 0 : index
    %2 = memref.load %arg2[%c0_0] : memref<1xf32, #tpu.memory_space<smem>>
    %c0_1 = arith.constant 0 : index
    %c0_2 = arith.constant 0 : index
    %3 = vector.load %arg3[%c0_1, %c0_2] : memref<2x128xf32, #tpu.memory_space<vmem>>, vector<1x128xf32>
    %c1_3 = arith.constant 1 : index
    %c0_4 = arith.constant 0 : index
    %4 = vector.load %arg3[%c1_3, %c0_4] : memref<2x128xf32, #tpu.memory_space<vmem>>, vector<1x128xf32>
    %5 = vector.broadcast %0 : f32 to vector<1x128xf32>
    %6 = arith.mulf %3, %5 : vector<1x128xf32>
    %7 = vector.broadcast %1 : f32 to vector<1x128xf32>
    %8 = arith.mulf %4, %7 : vector<1x128xf32>
    %9 = arith.addf %6, %8 : vector<1x128xf32>
    %10 = vector.broadcast %2 : f32 to vector<1x128xf32>
    %11 = arith.addf %9, %10 : vector<1x128xf32>
    %cst = arith.constant 0.000000e+00 : f32
    %12 = vector.broadcast %cst : f32 to vector<1x128xf32>
    %13 = arith.subf %12, %11 : vector<1x128xf32>
    %14 = math.exp %13 : vector<1x128xf32>
    %cst_5 = arith.constant 1.000000e+00 : f32
    %15 = vector.broadcast %cst_5 : f32 to vector<1x128xf32>
    %16 = arith.addf %15, %14 : vector<1x128xf32>
    %17 = tpu.reciprocal %16 {approx = true} : vector<1x128xf32> -> vector<1x128xf32>
    %c0_6 = arith.constant 0 : index
    %c0_7 = arith.constant 0 : index
    %18 = vector.load %arg4[%c0_6, %c0_7] : memref<1x128xf32, #tpu.memory_space<vmem>>, vector<1x128xf32>
    tpu.vector_store %arg4[%c0_6, %c0_7], %17 {strides = array<i32>} : memref<1x128xf32, #tpu.memory_space<vmem>>, vector<1x128xf32>,
    return
  }
  func.func @transform_0(%arg0: i32) -> i32 {
    %c0_i32 = arith.constant 0 : i32
    %c0_i32_0 = arith.constant 0 : i32
    return %c0_i32 : i32
  }
  func.func @transform_1(%arg0: i32) -> i32 {
    %c0_i32 = arith.constant 0 : i32
    %c0_i32_0 = arith.constant 0 : i32
    return %c0_i32 : i32
  }
  func.func @transform_2(%arg0: i32) -> (i32, i32) {
    %c0_i32 = arith.constant 0 : i32
    %c0_i32_0 = arith.constant 0 : i32
    return %c0_i32, %arg0 : i32, i32
  }
  func.func @transform_3(%arg0: i32) -> (i32, i32) {
    %c0_i32 = arith.constant 0 : i32
    %c0_i32_0 = arith.constant 0 : i32
    return %c0_i32, %arg0 : i32, i32
  }
}

</mosaic_0001>

<bundles_post_ra>
// kernel: tpu_custom_call.1
= control target key start
LH: loop header
LB: loop body
LE: loop exit
PB: predicated region body
PF: predicated region fallthrough
CT: control target
= control target key end

     0   :  { %9 = vsyncpa [#allocation5], 0  ;;  %s148_s0 = inlined_call_operand.hbm [shape: f32[2], index: 0, kind: input, shape index: {}]   ;;  %s149_s1 = inlined_call_operand.<no memory space> [shape: f32[1], index: 1, kind: input, shape index: {}]   ;;  %s150_s2 = inlined_call_operand.vmem [shape: f32[2,128], index: 2, kind: input, shape index: {}]   ;;  %s151_s3 = inlined_call_operand.hbm [shape: f32[1,128], index: 3, kind: output, shape index: {}]  }
   0x1   :  { %10 = vsyncpa [#allocation4], 0  ;;  %s16_s14 = sshll.u32 %s148_s0, 4  ;;  %s111_s15 = smov [#allocation3]   ;;  %s17_s14 = int_to_ptr.hbm [resolvable:$true] %s16_s14 }
   0x2   :  { %19 = dma.hbm_to_smem %s17_s14, 16, %s111_s15, [#allocation5]  }
   0x3   :  { %107 = dma.done.wait [#allocation5], 16  }
   0x4   :  { %108 = vsyncadd [#allocation5], 4294967280 }
   0x5   :  { %28 = sfence }
   0x6   :  { %s29_s16 = sld [smem:[#allocation3]]  ;;  %v32_v0 = vld [vmem:[%s150_s2] sm:$0x1]  ;;  %v33_v1 = vld [vmem:[%s150_s2 + $0x1] sm:$0x1]  ;;  %v39_v6 = vstv %s149_s1  ;;  %s112_s23 = smov [#allocation6]  }
   0x7   :  { %s64_s17 = sld [smem:[#allocation3 + $0x1]]  ;;  %s52_s24 = sshll.u32 %s112_s23, 4  ;;  %s53_s24 = int_to_ptr.vmem [resolvable:$true] %s52_s24 }
   0x8   :  { %s54_s26 = sshll.u32 %s151_s3, 4  ;;  %s55_s26 = int_to_ptr.hbm [resolvable:$true] %s54_s26 }
   0xc   :  { %v34_v2 = vstv %s29_s16 }
   0xd   :  { %v35_v3 = vmul.f32 %v34_v2, %v32_v0  ;;  %v36_v4 = vstv %s64_s17 }
   0xe   :  { %v37_v5 = vmul.f32 %v36_v4, %v33_v1 }
  0x10   :  { %v38_v7 = vadd.f32 %v37_v5, %v35_v3 }
  0x12   :  { %v40_v8 = vadd.f32 %v39_v6, %v38_v7 }
  0x14   :  { %v41_v9 = vsub.f32 0.0, %v40_v8 }
  0x16   :  { %v42_v10 = vmul.f32 1.442695, %v41_v9 }
  0x18   :  { %67 = vpow2.f32 %v42_v10 }
  0x1e   :  { %v68_v11 = vpop.eup %67 }
  0x1f   :  { %v44_v12 = vadd.f32 1.0, %v68_v11 }
  0x21   :  { %69 = vrcp.f32 %v44_v12 }
  0x27   :  { %v70_v13 = vpop.eup %69 }
  0x28   :  { %46 = vst [vmem:[#allocation6] sm:$0x1] %v70_v13 }
  0x29   :  { %57 = dma.vmem_to_hbm [thread:$0]  %s53_s24, 16, %s55_s26, [#allocation4]  }
  0x2a   :  { %109 = dma.done.wait [#allocation4], 16  }
  0x2b   :  { %110 = vsyncadd [#allocation4], 4294967280 }
  0x2c   :  { %62 = vsyncpa [#allocation4], 1 }
  0x2d   :  { %63 = vsyncpa [#allocation5], 1 }

</bundles_post_ra>
